<compile_context>
chip_gen: v7x
topology: tpu7x:2x2x1
jax: 0.10.0
libtpu: 0.0.40
codegen_flags: <defaults>
</compile_context>

<pallas_src>
import functools
import math

import jax
import jax.numpy as jnp
from jax.experimental import pallas as pl
from jax.experimental.pallas import tpu as pltpu

LN_EPS = 1e-12


def _dot_t(x, w):
    # x: [M, K], w: [N, K] (PyTorch Linear layout) -> [M, N], f32 accumulation.
    # Transpose folded into the contraction (no runtime transpose / copy).
    return jax.lax.dot_general(
        x, w, (((1,), (1,)), ((), ())), preferred_element_type=jnp.float32)


# --------------------------------------------------------------------------
# Kernel 1: fused Q/K/V projection (one [tm, 3H] matmul), tiled over tokens.
# --------------------------------------------------------------------------
def _qkv_kernel(x_ref, w_ref, b_ref, qkv_ref):
    y = _dot_t(x_ref[...], w_ref[...]) + b_ref[...]          # [tm, 3H] f32
    qkv_ref[...] = y.astype(qkv_ref.dtype)                   # lane-dense store


# --------------------------------------------------------------------------
# Kernel 2: attention core, one batch (all heads) per grid step.
# Reads the [S, 3H] qkv block (lane-dense), thin [1, S] additive mask;
# writes a lane-dense [S, H] context block in the [T, H] layout.
# --------------------------------------------------------------------------
def _attn_core_kernel(qkv_ref, mask_ref, o_ref, *, scale, num_heads, head_dim):
    H = num_heads * head_dim
    qkv = qkv_ref[...]                               # [S, 3H], native dtype
    mask = mask_ref[...].astype(jnp.float32)         # [1, S], broadcasts over queries

    ctx_parts = []
    for h in range(num_heads):                       # unrolled at trace time
        lo = h * head_dim
        qh = qkv[:, lo:lo + head_dim]                          # [S, dH]
        kh = qkv[:, H + lo:H + lo + head_dim]                  # [S, dH]
        vh = qkv[:, 2 * H + lo:2 * H + lo + head_dim]          # [S, dH]

        # scores = q k^T / sqrt(dH) + mask  (native-dtype MXU, f32 accumulation)
        s = jax.lax.dot_general(qh, kh, (((1,), (1,)), ((), ())),
                                preferred_element_type=jnp.float32)  # [S, S]
        s = s * scale + mask

        # numerically-stable softmax over keys; reciprocal on the EUP slot
        m = jnp.max(s, axis=-1, keepdims=True)
        p = jnp.exp(s - m)
        l = jnp.sum(p, axis=-1, keepdims=True)
        p = p * pl.reciprocal(l, approx=True)

        # attention-prob dropout: inference identity
        ctx_parts.append(jnp.dot(p.astype(vh.dtype), vh,
                                 preferred_element_type=jnp.float32))  # [S, dH]

    ctx = jnp.concatenate(ctx_parts, axis=-1)        # [S, H] f32
    o_ref[...] = ctx.astype(o_ref.dtype)             # single lane-dense store


# --------------------------------------------------------------------------
# Kernel 3: output dense + residual + LayerNorm, tiled over tokens.
# --------------------------------------------------------------------------
def _output_kernel(c_ref, x_ref, w_ref, b_ref, g_ref, be_ref, o_ref):
    h = _dot_t(c_ref[...], w_ref[...]) + b_ref[...]            # [tm, H] f32
    # hidden dropout: inference identity
    y = h + x_ref[...].astype(jnp.float32)                     # residual
    inv_n = 1.0 / y.shape[-1]
    s1 = jnp.sum(y, axis=-1, keepdims=True)                    # two independent
    s2 = jnp.sum(y * y, axis=-1, keepdims=True)                # XLU reductions
    mean = s1 * inv_n
    var = s2 * inv_n - mean * mean
    yn = (y - mean) * jax.lax.rsqrt(var + LN_EPS)              # rsqrt -> EUP
    o_ref[...] = (g_ref[...] * yn + be_ref[...]).astype(o_ref.dtype)


# --------------------------------------------------------------------------
# Wrapper
# --------------------------------------------------------------------------
def _pick_tm(T):
    # 256 hides the per-step pipeline overhead on v5e/v6e and still fits v7x's
    # 64 MiB VMEM (32 MiB default scoped) with resident weights.
    for cand in (256, 128, 64, 32, 16, 8):
        if T % cand == 0:
            return cand
    return T


def attention_forward(input_tensor, attention_mask, params, *, tm=None,
                      compute_dtype=None):
    """input_tensor: [B, S, H]; attention_mask: additive, broadcastable to [B,1,1,S]
       (BERT-style key mask). params: PyTorch-layout weights (w*: [out, in])."""
    B, S, H = input_tensor.shape
    nH = params["num_heads"]
    dH = H // nH
    T = B * S
    in_dtype = input_tensor.dtype
    dtype = compute_dtype if compute_dtype is not None else in_dtype

    if tm is None:
        tm = _pick_tm(T)
    assert T % tm == 0, "token tile must divide B*S"

    x2d = input_tensor.reshape(T, H).astype(dtype)
    fsz = jnp.dtype(dtype).itemsize

    # Fused QKV weight/bias (PyTorch [out, in] layout preserved; no transposes).
    wqkv = jnp.concatenate(
        [params["wq"], params["wk"], params["wv"]], axis=0).astype(dtype)        # [3H, H]
    bqkv = jnp.concatenate(
        [params["bq"], params["bk"], params["bv"]]).reshape(1, 3 * H).astype(jnp.float32)

    cp = pltpu.CompilerParams(dimension_semantics=("parallel",),
                              vmem_limit_bytes=32 * 1024 * 1024)

    # --- Kernel 1: fused QKV projection ---------------------------------
    qkv_cost = pl.CostEstimate(
        flops=int(2 * T * H * 3 * H),
        transcendentals=0,
        bytes_accessed=int((T * H + T * 3 * H + 3 * H * H) * fsz + 3 * H * 4))
    qkv2d = pl.pallas_call(
        _qkv_kernel,
        out_shape=jax.ShapeDtypeStruct((T, 3 * H), dtype),
        grid_spec=pl.GridSpec(
            grid=(T // tm,),
            in_specs=[
                pl.BlockSpec((tm, H), lambda i: (i, 0)),
                pl.BlockSpec((3 * H, H), lambda i: (0, 0)),    # fused weight, resident
                pl.BlockSpec((1, 3 * H), lambda i: (0, 0)),    # fused bias, resident
            ],
            out_specs=pl.BlockSpec((tm, 3 * H), lambda i: (i, 0)),
        ),
        compiler_params=cp,
        cost_estimate=qkv_cost,
    )(x2d, wqkv, bqkv)

    # Free reshapes only (no head-split transposes, no mask broadcast to [B,1,S,S]).
    qkv3 = qkv2d.reshape(B, S, 3 * H)
    mask_thin = jnp.broadcast_to(attention_mask, (B, 1, 1, S)).astype(jnp.float32)

    # --- Kernel 2: attention core (per batch, all heads) ------------------
    scale = 1.0 / math.sqrt(dH)
    attn_cost = pl.CostEstimate(
        flops=int(4 * B * nH * S * S * dH),
        transcendentals=int(B * nH * S * S),
        bytes_accessed=int(B * S * 4 * H * fsz + B * S * 4))
    sq = pl.Squeezed()
    ctx3 = pl.pallas_call(
        functools.partial(_attn_core_kernel, scale=scale,
                          num_heads=nH, head_dim=dH),
        out_shape=jax.ShapeDtypeStruct((B, S, H), dtype),
        grid_spec=pl.GridSpec(
            grid=(B,),
            in_specs=[
                pl.BlockSpec((sq, S, 3 * H), lambda b: (b, 0, 0)),
                pl.BlockSpec((sq, sq, 1, S), lambda b: (b, 0, 0, 0)),
            ],
            out_specs=pl.BlockSpec((sq, S, H), lambda b: (b, 0, 0)),
        ),
        compiler_params=cp,
        cost_estimate=attn_cost,
    )(qkv3, mask_thin)

    ctx2d = ctx3.reshape(T, H)     # free reshape into the [T, H] layout kernel 3 wants

    # --- Kernel 3: output dense + residual + LayerNorm --------------------
    out_cost = pl.CostEstimate(
        flops=int(2 * T * H * H + 10 * T * H),
        transcendentals=int(T),
        bytes_accessed=int((3 * T * H + H * H) * fsz))
    out2d = pl.pallas_call(
        _output_kernel,
        out_shape=jax.ShapeDtypeStruct((T, H), in_dtype),
        grid_spec=pl.GridSpec(
            grid=(T // tm,),
            in_specs=[
                pl.BlockSpec((tm, H), lambda i: (i, 0)),
                pl.BlockSpec((tm, H), lambda i: (i, 0)),
                pl.BlockSpec((H, H), lambda i: (0, 0)),        # Wo resident
                pl.BlockSpec((1, H), lambda i: (0, 0)),
                pl.BlockSpec((1, H), lambda i: (0, 0)),
                pl.BlockSpec((1, H), lambda i: (0, 0)),
            ],
            out_specs=pl.BlockSpec((tm, H), lambda i: (i, 0)),
        ),
        compiler_params=cp,
        cost_estimate=out_cost,
    )(ctx2d, x2d, params["wo"].astype(dtype),
      params["bo"].reshape(1, H).astype(jnp.float32),
      params["gamma"].reshape(1, H).astype(jnp.float32),
      params["beta"].reshape(1, H).astype(jnp.float32))

    return out2d.reshape(B, S, H)


# --------------------------------------------------------------------------
# Pure-JAX reference (mirrors the PyTorch module exactly)
# --------------------------------------------------------------------------
def reference_attention(x, attention_mask, params):
    B, S, H = x.shape
    nH = params["num_heads"]
    dH = H // nH

    def lin(t, w, b):
        return jnp.einsum("bsh,oh->bso", t, w) + b

    def heads(t):
        return t.reshape(B, S, nH, dH).transpose(0, 2, 1, 3)

    q = heads(lin(x, params["wq"], params["bq"]))
    k = heads(lin(x, params["wk"], params["bk"]))
    v = heads(lin(x, params["wv"], params["bv"]))
    s = jnp.einsum("bhqd,bhkd->bhqk", q, k) / math.sqrt(dH)
    s = s + attention_mask
    p = jax.nn.softmax(s, axis=-1)
    ctx = jnp.einsum("bhqk,bhkd->bhqd", p, v).transpose(0, 2, 1, 3).reshape(B, S, H)
    h = lin(ctx, params["wo"], params["bo"])
    y = h + x
    u = jnp.mean(y, axis=-1, keepdims=True)
    var = jnp.mean((y - u) ** 2, axis=-1, keepdims=True)
    yn = (y - u) / jnp.sqrt(var + LN_EPS)
    return params["gamma"] * yn + params["beta"]


if __name__ == "__main__":
    B, S, H, NHEADS = 2, 32, 128, 4        # hidden multiple of 128 -> lane-dense stores

    key = jax.random.PRNGKey(0)
    ks = jax.random.split(key, 10)

    x = jax.random.normal(ks[0], (B, S, H), dtype=jnp.float32)

    # BERT-style additive mask [B, 1, 1, S]: 0 for visible keys, -10000 for masked keys.
    keep = jnp.ones((B, 1, 1, S), dtype=jnp.float32)
    keep = keep.at[1, :, :, S - 4:].set(0.0)
    attention_mask = (1.0 - keep) * -10000.0

    def init_linear(kw, kb, fan_in, fan_out):
        bound = 1.0 / math.sqrt(fan_in)
        w = jax.random.uniform(kw, (fan_out, fan_in), jnp.float32, -bound, bound)
        b = jax.random.uniform(kb, (fan_out,), jnp.float32, -bound, bound)
        return w, b

    wq, bq = init_linear(ks[1], ks[2], H, H)
    wk, bk = init_linear(ks[3], ks[4], H, H)
    wv, bv = init_linear(ks[5], ks[6], H, H)
    wo, bo = init_linear(ks[7], ks[8], H, H)

    params = dict(
        num_heads=NHEADS,
        wq=wq, bq=bq, wk=wk, bk=bk, wv=wv, bv=bv, wo=wo, bo=bo,
        gamma=jnp.ones((H,), jnp.float32),
        beta=jnp.zeros((H,), jnp.float32),
    )

    out = attention_forward(x, attention_mask, params, tm=16)   # grid=(4,), exercises pipelining
    out = jax.block_until_ready(out)

    ref = reference_attention(x, attention_mask, params)
    assert out.shape == (B, S, H)
    max_err = float(jnp.max(jnp.abs(out - ref)))
    assert jnp.allclose(out, ref, atol=2e-3, rtol=2e-3), f"mismatch vs reference, max err {max_err}"

    print("KERNEL_OK")
</pallas_src>

<mosaic_0001>
module attributes {stable_mosaic.version = 11 : i64} {
  func.func @_qkv_kernel(%arg0: i32, %arg1: memref<16x128xf32, #tpu.memory_space<vmem>>, %arg2: memref<384x128xf32, #tpu.memory_space<vmem>>, %arg3: memref<1x384xf32, #tpu.memory_space<vmem>>, %arg4: memref<16x384xf32, #tpu.memory_space<vmem>>) attributes {dimension_semantics = [#tpu.dimension_semantics<parallel>], iteration_bounds = array<i64: 4>, scalar_prefetch = 0 : i64, scratch_operands = 0 : i64, tpu.core_type = #tpu.core_type<tc>, window_params = [{transform_indices = @transform_0, window_bounds = array<i64: 16, 128>}, {pipeline_mode = #tpu.pipeline_mode<synchronous>, transform_indices = @transform_1, window_bounds = array<i64: 384, 128>}, {pipeline_mode = #tpu.pipeline_mode<synchronous>, transform_indices = @transform_2, window_bounds = array<i64: 1, 384>}, {transform_indices = @transform_3, window_bounds = array<i64: 16, 384>}]} {
    %c0 = arith.constant 0 : index
    %c0_0 = arith.constant 0 : index
    %0 = vector.load %arg1[%c0, %c0_0] : memref<16x128xf32, #tpu.memory_space<vmem>>, vector<16x128xf32>
    %c0_1 = arith.constant 0 : index
    %c0_2 = arith.constant 0 : index
    %1 = vector.load %arg2[%c0_1, %c0_2] : memref<384x128xf32, #tpu.memory_space<vmem>>, vector<384x128xf32>
    %cst = arith.constant dense<0.000000e+00> : vector<16x384xf32>
    %2 = tpu.matmul %0, %1, %cst {dimension_numbers = #tpu.dot_dimension_numbers<[1], [1], [0], [0], [0, 0, 1, 0], [], []>} : vector<16x128xf32>, vector<384x128xf32>, vector<16x384xf32> -> vector<16x384xf32>
    %c0_3 = arith.constant 0 : index
    %c0_4 = arith.constant 0 : index
    %3 = vector.load %arg3[%c0_3, %c0_4] : memref<1x384xf32, #tpu.memory_space<vmem>>, vector<1x384xf32>
    %4 = vector.broadcast %3 : vector<1x384xf32> to vector<16x384xf32>
    %5 = arith.addf %2, %4 : vector<16x384xf32>
    %c0_5 = arith.constant 0 : index
    %c0_6 = arith.constant 0 : index
    %6 = vector.load %arg4[%c0_5, %c0_6] : memref<16x384xf32, #tpu.memory_space<vmem>>, vector<16x384xf32>
    tpu.vector_store %arg4[%c0_5, %c0_6], %5 {strides = array<i32>} : memref<16x384xf32, #tpu.memory_space<vmem>>, vector<16x384xf32>,
    return
  }
  func.func @transform_0(%arg0: i32) -> (i32, i32) {
    %c0_i32 = arith.constant 0 : i32
    %c0_i32_0 = arith.constant 0 : i32
    return %arg0, %c0_i32 : i32, i32
  }
  func.func @transform_1(%arg0: i32) -> (i32, i32) {
    %c0_i32 = arith.constant 0 : i32
    %c0_i32_0 = arith.constant 0 : i32
    %c0_i32_1 = arith.constant 0 : i32
    return %c0_i32, %c0_i32_0 : i32, i32
  }
  func.func @transform_2(%arg0: i32) -> (i32, i32) {
    %c0_i32 = arith.constant 0 : i32
    %c0_i32_0 = arith.constant 0 : i32
    %c0_i32_1 = arith.constant 0 : i32
    return %c0_i32, %c0_i32_0 : i32, i32
  }
  func.func @transform_3(%arg0: i32) -> (i32, i32) {
    %c0_i32 = arith.constant 0 : i32
    %c0_i32_0 = arith.constant 0 : i32
    return %arg0, %c0_i32 : i32, i32
  }
}

</mosaic_0001>

<bundles_post_ra>
// kernel: tpu_custom_call.1
= control target key start
LH: loop header
LB: loop body
LE: loop exit
PB: predicated region body
PF: predicated region fallthrough
CT: control target
= control target key end

     0   :  { %8 = vsyncpa [#allocation3], 0  ;;  %s1129_s0 = inlined_call_operand.hbm [shape: f32[64,128], index: 0, kind: input, shape index: {}]   ;;  %s1130_s1 = inlined_call_operand.hbm [shape: f32[384,128], index: 1, kind: input, shape index: {}]   ;;  %s1131_s2 = inlined_call_operand.vmem [shape: f32[1,384], index: 2, kind: input, shape index: {}]   ;;  %s1132_s3 = inlined_call_operand.hbm [shape: f32[64,384], index: 3, kind: output, shape index: {}]  }
   0x1   :  { %10 = vsyncpa [#allocation3 + $0x1], 0 }
   0x2   :  { %11 = vsyncpa [#allocation6], 0 }
   0x3   :  { %12 = vsyncpa [#allocation4], 0 }
   0x4   :  { %14 = vsyncpa [#allocation4 + $0x1], 0  ;;  %s918_s12 = smov 0   ;;  %s920_s13 = smov 0  }
   0x5   :  { %s922_s14 = smov 0   ;;  %s924_s15 = smov 0  }
   0x6 LB: > { %s939_s16 = sadd.s32 4294967295, %s889_s15   ;;  %s529_s17 = sadd.s32 4294967294, %s889_s15   ;;  %s889_s15 = sphi %s924_s15, %s1151_s15   ;;  %s885_s14 = sphi %s922_s14, %s1150_s14   ;;  %s881_s13 = sphi %s920_s13, %s1149_s13   ;;  %s877_s12 = sphi %s918_s12, %s1148_s12  }
   0x7   : > { %p40_p0 = scmp.ne.s32.totalorder %s881_s13, %s877_s12  ;;  %p1133_p1 = scmp.eq.s32.totalorder %s939_s16, 0 }
   0x8   : > { %p112_p3 = scmp.eq.s32.totalorder %s529_s17, 3  ;;  %p530_p5 = scmp.ge.s32.totalorder %s889_s15, 1 }
   0x9   : > { %p948_p4 = por %p1133_p1, %p40_p0  ;;  %p119_p7 = scmp.lt.s32.totalorder %s889_s15, 5 }
   0xa   : > { %p953_p6 = por %p112_p3, %p40_p0  ;;  %s891_s21 = smov [#allocation5]  }
   0xb   : > { %s1136_s18 = scalar_select %p948_p4, 1, 0 }
   0xc   : > { %s1137_s19 = scalar_select %p953_p6, 1, 0 }
   0xd   : > { %p958_p8 = pnand %p530_p5, %p119_p7  ;;  %s131_s22 = sshll.u32 %s891_s21, 4  ;;  %s132_s22 = int_to_ptr.vmem [resolvable:$true] %s131_s22 }
   0xe   : > { %s971_s24 = sadd.s32 1, %s889_s15   ;;  %s27_s25 = sadd.s32 1, %s885_s14 }
   0xf   : > { %s1138_s20 = scalar_select %p958_p8, 1, 0 }
  0x10   : > { %p708_p9 = pneg %p958_p8  ;;  %s24_s26 = ssub.s32 %s889_s15, %s971_s24 }
  0x11   : > { %s761_s29 = scalar_lea.hbm %s1130_s1, 6144 }
  0x12   : > { %p966_p10 = pnand %p708_p9, %p1133_p1  ;;  %p762_p11 = scmp.ne.s32.totalorder %s1130_s1, %s761_s29 }
  0x13   : > { %p768_p3 = scmp.lt.u32.totalorder %s761_s29, %s1130_s1 }
  0x14   : > { %p763_p12 = pneg %p966_p10 }
  0x16   : > { %p764_p13 = pnand %p763_p12, %p762_p11 }
  0x18   : > { %p765_p0 = pneg %p764_p13 }
  0x1a   : > { %p770_p5 = pnand %p768_p3, %p765_p0 }
  0x1c   : > { %773 = shalt.err (!%p770_p5)
}
  0x1d   : > { %s774_s7 = scalar_lea.vmem %s132_s22, 6144  ;;  %p782_p2 = scmp.lt.s32.totalorder %s132_s22, %s132_s22 }
  0x1e   : > { %p775_p7 = scmp.ne.s32.totalorder %s132_s22, %s774_s7  ;;  %p783_p6 = scmp.lt.s32.totalorder %s774_s7, %s774_s7 }
  0x20   : > { %p777_p9 = pnand %p775_p7, %p763_p12  ;;  %p784_p4 = por %p783_p6, %p782_p2 }
  0x22   : > { %p778_p1 = pneg %p777_p9 }
  0x24   : > { %p785_p8 = pnand %p784_p4, %p778_p1 }
  0x26   : > { %788 = shalt.err (!%p785_p8)
}
  0x27   : > { %s892_s8 = smov 128   ;;  %s893_s9 = smov 8  }
  0x28   : > { %711 = dma.hbm_to_vmem [thread:$0]  (!%p966_p10), %s1130_s1, 6144, %s132_s22, [#allocation6], %s892_s8, %s892_s8, %s893_s9  }
  0x29   : > { %p25_p1 = scmp.eq.s32.totalorder %s24_s26, 0  ;;  %p34_p2 = scmp.ne.s32.totalorder %s885_s14, %s881_s13 }
  0x2a   : > { %p35_p4 = scmp.eq.s32.totalorder %s889_s15, 0  ;;  %p721_p6 = scmp.lt.s32.totalorder %s889_s15, 4 }
  0x2b   : > { %s1000_s17 = scalar_select %p25_p1, %s885_s14, %s27_s25  }
  0x2c   : > { %p36_p8 = por %p35_p4, %p34_p2  ;;  %p1140_p11 = scmp.eq.s32.totalorder %s939_s16, 3 }
  0x2d   : > { %s148_s23 = sand.u32 1, %s885_s14   ;;  %s544_s27 = sshll.u32 %s889_s15, 8 }
  0x2e   : > { %p1004_p12 = por %p1140_p11, %p34_p2  ;;  %s533_s28 = sshll.u32 %s148_s23, 4 }
  0x2f   : > { %s1013_s4 = scalar_lea.hbm %s1129_s0, %s544_s27  ;;  %s152_s22 = scalar_lea.vmem [#allocation2], %s533_s28 }
  0x30   : > { %s159_s25 = sshll.u32 %s152_s22, 4  ;;  %p1015_p10 = pnand %p721_p6, %p36_p8  ;;  %s1019_s25 = int_to_ptr.vmem [resolvable:$true] %s159_s25 }
  0x31   : > { %s1021_s5 = scalar_lea.sflag [#allocation3], %s148_s23  ;;  %s789_s6 = scalar_lea.hbm %s1013_s4, 256 }
  0x32   : > { %p790_p13 = scmp.ne.s32.totalorder %s1013_s4, %s789_s6  ;;  %p791_p0 = pneg %p1015_p10 }
  0x33   : > { %s794_s11 = scalar_lea.hbm %s1129_s0, 1024  ;;  %p795_p7 = scmp.lt.u32.totalorder %s1013_s4, %s1129_s0 }
  0x34   : > { %p792_p3 = pnand %p791_p0, %p790_p13  ;;  %p796_p9 = scmp.lt.u32.totalorder %s794_s11, %s789_s6 }
  0x35   : > { %p798_p2 = scmp.lt.u32.totalorder %s789_s6, %s1013_s4 }
  0x36   : > { %p793_p5 = pneg %p792_p3  ;;  %p797_p1 = por %p796_p9, %p795_p7 }
  0x38   : > { %p799_p4 = por %p798_p2, %p797_p1 }
  0x3a   : > { %p800_p6 = pnand %p799_p4, %p793_p5 }
  0x3c   : > { %803 = shalt.err (!%p800_p6)
}
  0x3d   : > { %s804_s23 = scalar_lea.vmem %s1019_s25, 256  ;;  %s894_s29 = smov [#allocation2]  }
  0x3e   : > { %p805_p8 = scmp.ne.s32.totalorder %s1019_s25, %s804_s23  ;;  %s809_s30 = sshll.u32 %s894_s29, 4  ;;  %s810_s30 = int_to_ptr.vmem [resolvable:$false] %s809_s30 }
  0x3f   : > { %s811_s22 = scalar_lea.vmem %s810_s30, 512  ;;  %p812_p3 = scmp.lt.s32.totalorder %s1019_s25, %s810_s30 }
  0x40   : > { %p807_p11 = pnand %p805_p8, %p791_p0  ;;  %p813_p7 = scmp.lt.s32.totalorder %s811_s22, %s804_s23 }
  0x42   : > { %p808_p13 = pneg %p807_p11  ;;  %p814_p9 = por %p813_p7, %p812_p3 }
  0x44   : > { %p815_p1 = pnand %p814_p9, %p808_p13 }
  0x46   : > { %818 = shalt.err (!%p815_p1)
}
  0x47   : > { %715 = dma.hbm_to_vmem [thread:$0]  (!%p1015_p10), %s1013_s4, 256, %s1019_s25, %s1021_s5, %s892_s8, %s892_s8, %s893_s9  }
  0x48   : > { %p1143_p0 = scmp.ne.s32.totalorder %s1138_s20, 0 }
  0x49   : > { %s1055_s6 = sand.u32 (!%p1143_p0), 1, %s881_s13   ;;  %p1144_p5 = scmp.ne.s32.totalorder (!%p1143_p0), %s1136_s18, 0 }
  0x4a   : > { %171 = sbr.rel (%p1143_p0) target bundleno = 386 (0x182), region = 32  ;;  %s537_s7 = sshll.u32 (!%p1143_p0), %s1055_s6, 4 }
  0x4b   : > { %s174_s10 = scalar_lea.sflag (!%p1143_p0), [#allocation3], %s1055_s6  ;;  %s1059_s11 = scalar_lea.vmem (!%p1143_p0), [#allocation2], %s537_s7 }
  0x51   : > { %864 = dma.done.wait (%p1144_p5), %s174_s10, 256  }
  0x52   : > { %866 = vsyncadd (%p1144_p5), %s174_s10, 4294967040  ;;  %p1145_p10 = scmp.eq.s32.totalorder %s939_s16, 0 }
  0x54   : > { %868 = dma.done.wait (%p1145_p10), [#allocation6], 6144   ;;  %p1146_p2 = pmov %p1145_p10 }
  0x55   : > { %v224_v0 = vld [vmem:[#allocation5 + $0x80] sm:$0xff]  ;;  %v225_v1 = vld [vmem:[#allocation5 + $0x88] sm:$0xff]  ;;  %v226_v9 = vld [vmem:[#allocation5 + $0x90] sm:$0xff]  ;;  %s698_s8 = smul.u32 48, %s1055_s6  ;;  %s432_s27 = scalar_lea.sflag [#allocation4], %s1055_s6 }
  0x56   : > { %870 = vsyncadd (%p1146_p2), [#allocation6], 4294961152  ;;  %v208_v2 = vld [vmem:[#allocation5] sm:$0xff]  ;;  %v634_v3 = vpack.c.bf16 %v225_v1, %v224_v0  ;;  %v209_v4 = vld [vmem:[#allocation5 + $0x8] sm:$0xff]  ;;  %s699_s25 = smul.u32 768, %s939_s16  ;;  %s895_s23 = smov [#allocation7]  }
  0x57   : > { %v240_v5 = vld [vmem:[#allocation5 + $0x100] sm:$0xff]  ;;  %v241_v6 = vld [vmem:[#allocation5 + $0x108] sm:$0xff]  ;;  %v636_v7 = vpack.c.bf16 %v209_v4, %v208_v2  ;;  %v227_v10 = vld [vmem:[#allocation5 + $0x98] sm:$0xff]  ;;  %s203_s9 = scalar_lea.vmem [#allocation7], %s698_s8  ;;  %s823_s29 = sshll.u32 %s895_s23, 4  ;;  %s824_s29 = int_to_ptr.vmem [resolvable:$false] %s823_s29 }
  0x58   : > { %v666_v8 = vpack.c.bf16 %v241_v6, %v240_v5  ;;  %635 = vmatprep.subr.bf16.mxu0 %v634_v3  ;;  %v638_v11 = vpack.c.bf16 %v227_v10, %v226_v9  ;;  %v242_v12 = vld [vmem:[#allocation5 + $0x110] sm:$0xff]  ;;  %v243_v13 = vld [vmem:[#allocation5 + $0x118] sm:$0xff]  ;;  %v228_v17 = vld [vmem:[#allocation5 + $0xa0] sm:$0xff]  ;;  %v258_v10 = vlaneseq  ;;  %s446_s4 = sshll.u32 %s203_s9, 4  ;;  %s1086_s5 = scalar_lea.hbm %s1132_s3, %s699_s25  ;;  %s1081_s4 = int_to_ptr.vmem [resolvable:$true] %s446_s4 }
  0x59   : > { %637 = vmatpush3.bf16.xpose.msra.mxu0 %v636_v7  ;;  %v670_v14 = vpack.c.bf16 %v243_v13, %v242_v12  ;;  %v210_v15 = vld [vmem:[#allocation5 + $0x10] sm:$0xff]  ;;  %v211_v16 = vld [vmem:[#allocation5 + $0x18] sm:$0xff]  ;;  %v229_v18 = vld [vmem:[#allocation5 + $0xa8] sm:$0xff]  ;;  %s819_s28 = scalar_lea.vmem %s1081_s4, 768  ;;  %s825_s30 = scalar_lea.vmem %s824_s29, 1536 }
  0x5a   : > { %667 = vmatprep.subr.bf16.mxu1 %v666_v8  ;;  %639 = vmatprep.subr.bf16.mxu0 %v638_v11  ;;  %v244_v19 = vld [vmem:[#allocation5 + $0x120] sm:$0xff]  ;;  %v245_v20 = vld [vmem:[#allocation5 + $0x128] sm:$0xff]  ;;  %v640_v21 = vpack.c.bf16 %v211_v16, %v210_v15  ;;  %v642_v22 = vpack.c.bf16 %v229_v18, %v228_v17  ;;  %v230_v26 = vld [vmem:[#allocation5 + $0xb0] sm:$0xff]  ;;  %v259_v11 = vshrl.u32 %v258_v10, 7  ;;  %p820_p4 = scmp.ne.s32.totalorder %s1081_s4, %s819_s28  ;;  %p826_p11 = scmp.lt.s32.totalorder %s1081_s4, %s824_s29 }
  0x5b   : > { %669 = vmatpush3.bf16.xpose.msra.mxu1 %v666_v8  ;;  %v674_v23 = vpack.c.bf16 %v245_v20, %v244_v19  ;;  %v212_v24 = vld [vmem:[#allocation5 + $0x20] sm:$0xff]  ;;  %v213_v25 = vld [vmem:[#allocation5 + $0x28] sm:$0xff]  ;;  %v231_v27 = vld [vmem:[#allocation5 + $0xb8] sm:$0xff]  ;;  %p827_p13 = scmp.lt.s32.totalorder %s825_s30, %s819_s28 }
  0x5c   : > { %671 = vmatprep.subr.bf16.mxu1 %v670_v14  ;;  %v246_v28 = vld [vmem:[#allocation5 + $0x130] sm:$0xff]  ;;  %v247_v29 = vld [vmem:[#allocation5 + $0x138] sm:$0xff]  ;;  %v644_v30 = vpack.c.bf16 %v213_v25, %v212_v24  ;;  %v646_v32 = vpack.c.bf16 %v231_v27, %v230_v26  ;;  %v232_v36 = vld [vmem:[#allocation5 + $0xc0] sm:$0xff]  ;;  %v260_v12 = vsub.s32 0, %v259_v11  ;;  %v268_v15 = vsub.s32 2, %v259_v11  ;;  %p821_p6 = pnand %p820_p4, %p1004_p12 }
  0x5d   : > { %v1070_v31 = vld [vmem:[%s1059_s11] sm:$0xff]  ;;  %v678_v33 = vpack.c.bf16 %v247_v29, %v246_v28  ;;  %v215_v35 = vld [vmem:[#allocation5 + $0x38] sm:$0xff]  ;;  %v233_v37 = vld [vmem:[#allocation5 + $0xc8] sm:$0xff]  ;;  %p828_p3 = por %p827_p13, %p826_p11 }
  0x5e   : > { %577 = vmatprep.mubr.f32.mxu0 %v1070_v31  ;;  %631 = vmatprep.mubr.f32.mxu1 %v1070_v31  ;;  %v214_v34 = vld [vmem:[#allocation5 + $0x30] sm:$0xff]  ;;  %v248_v38 = vld [vmem:[#allocation5 + $0x140] sm:$0xff]  ;;  %v249_v39 = vld [vmem:[#allocation5 + $0x148] sm:$0xff]  ;;  %v650_v41 = vpack.c.bf16 %v233_v37, %v232_v36  ;;  %p822_p8 = pneg %p821_p6 }
  0x5f   : > { %v648_v40 = vpack.c.bf16 %v215_v35, %v214_v34  ;;  %v682_v42 = vpack.c.bf16 %v249_v39, %v248_v38  ;;  %v216_v43 = vld [vmem:[#allocation5 + $0x40] sm:$0xff]  ;;  %v217_v44 = vld [vmem:[#allocation5 + $0x48] sm:$0xff]  ;;  %v234_v45 = vld [vmem:[#allocation5 + $0xd0] sm:$0xff] }
  0x60   : > { %v235_v46 = vld [vmem:[#allocation5 + $0xd8] sm:$0xff]  ;;  %v250_v47 = vld [vmem:[#allocation5 + $0x150] sm:$0xff]  ;;  %v652_v49 = vpack.c.bf16 %v217_v44, %v216_v43  ;;  %v236_v54 = vld [vmem:[#allocation5 + $0xe0] sm:$0xff]  ;;  %p829_p7 = pnand %p828_p3, %p822_p8 }
  0x61   : > { %641 = vmatpush3.bf16.xpose.msra.mxu0 %v640_v21  ;;  %v251_v48 = vld [vmem:[#allocation5 + $0x158] sm:$0xff]  ;;  %v654_v50 = vpack.c.bf16 %v235_v46, %v234_v45  ;;  %v218_v52 = vld [vmem:[#allocation5 + $0x50] sm:$0xff]  ;;  %v237_v55 = vld [vmem:[#allocation5 + $0xe8] sm:$0xff] }
  0x62   : > { %643 = vmatprep.subr.bf16.mxu0 %v642_v22  ;;  %v686_v51 = vpack.c.bf16 %v251_v48, %v250_v47  ;;  %v219_v53 = vld [vmem:[#allocation5 + $0x58] sm:$0xff]  ;;  %v252_v56 = vld [vmem:[#allocation5 + $0x160] sm:$0xff]  ;;  %v253_v57 = vld [vmem:[#allocation5 + $0x168] sm:$0xff]  ;;  %v658_v59 = vpack.c.bf16 %v237_v55, %v236_v54 }
  0x63   : > { %673 = vmatpush3.bf16.xpose.msra.mxu1 %v670_v14  ;;  %v656_v58 = vpack.c.bf16 %v219_v53, %v218_v52  ;;  %v690_v60 = vpack.c.bf16 %v253_v57, %v252_v56  ;;  %v220_v61 = vld [vmem:[#allocation5 + $0x60] sm:$0xff]  ;;  %v221_v62 = vld [vmem:[#allocation5 + $0x68] sm:$0xff]  ;;  %v238_v63 = vld [vmem:[#allocation5 + $0xf0] sm:$0xff]  ;;  %v264_v14 = vsub.s32 1, %v259_v11 }
  0x64   : > { %675 = vmatprep.subr.bf16.mxu1 %v674_v23  ;;  %v239_v0 = vld [vmem:[#allocation5 + $0xf8] sm:$0xff]  ;;  %v254_v1 = vld [vmem:[#allocation5 + $0x170] sm:$0xff]  ;;  %v660_v3 = vpack.c.bf16 %v221_v62, %v220_v61  ;;  %v256_v13 = vld [vmem:[%s1131_s2] sm:$0x7] }
  0x65   : > { %v255_v2 = vld [vmem:[#allocation5 + $0x178] sm:$0xff]  ;;  %v662_v4 = vpack.c.bf16 %v239_v0, %v238_v63  ;;  %v222_v6 = vld [vmem:[#allocation5 + $0x70] sm:$0xff]  ;;  %v261_v16 = vrot.slane %v256_v13, %v260_v12  ;;  %v265_v17 = vrot.slane %v256_v13, %v264_v14  ;;  %v269_v18 = vrot.slane %v256_v13, %v268_v15 }
  0x66   : > { %v694_v5 = vpack.c.bf16 %v255_v2, %v254_v1  ;;  %v223_v7 = vld [vmem:[#allocation5 + $0x78] sm:$0xff] }
  0x67   : > { %v664_v8 = vpack.c.bf16 %v223_v7, %v222_v6  ;;  %v207_v9 = vld [vmem:[%s1059_s11 + $0x8] sm:$0xff] }
  0x69   : > { %645 = vmatpush3.bf16.xpose.msra.mxu0 %v644_v30 }
  0x6a   : > { %647 = vmatprep.subr.bf16.mxu0 %v646_v32 }
  0x6b   : > { %677 = vmatpush3.bf16.xpose.msra.mxu1 %v674_v23 }
  0x6c   : > { %679 = vmatprep.subr.bf16.mxu1 %v678_v33 }
  0x71   : > { %649 = vmatpush3.bf16.xpose.msra.mxu0 %v648_v40 }
  0x72   : > { %651 = vmatprep.subr.bf16.mxu0 %v650_v41 }
  0x73   : > { %681 = vmatpush3.bf16.xpose.msra.mxu1 %v678_v33 }
  0x74   : > { %683 = vmatprep.subr.bf16.mxu1 %v682_v42 }
  0x79   : > { %653 = vmatpush3.bf16.xpose.msra.mxu0 %v652_v49 }
  0x7a   : > { %655 = vmatprep.subr.bf16.mxu0 %v654_v50 }
  0x7b   : > { %685 = vmatpush3.bf16.xpose.msra.mxu1 %v682_v42 }
  0x7c   : > { %687 = vmatprep.subr.bf16.mxu1 %v686_v51 }
  0x81   : > { %657 = vmatpush3.bf16.xpose.msra.mxu0 %v656_v58 }
  0x82   : > { %659 = vmatprep.subr.bf16.mxu0 %v658_v59 }
  0x83   : > { %689 = vmatpush3.bf16.xpose.msra.mxu1 %v686_v51 }
  0x84   : > { %691 = vmatprep.subr.bf16.mxu1 %v690_v60 }
  0x89   : > { %661 = vmatpush3.bf16.xpose.msra.mxu0 %v660_v3 }
  0x8a   : > { %663 = vmatprep.subr.bf16.mxu0 %v662_v4 }
  0x8b   : > { %693 = vmatpush3.bf16.xpose.msra.mxu1 %v690_v60 }
  0x8c   : > { %695 = vmatprep.subr.bf16.mxu1 %v694_v5 }
  0x91   : > { %665 = vmatpush3.bf16.xpose.msra.mxu0 %v664_v8 }
  0x93   : > { %697 = vmatpush3.bf16.xpose.msra.mxu1 %v694_v5 }
  0x98   : > { %578 = vmatmul.mubr.f32.vlgmr.msra.gmra.mrb[0].mxu0 %v1070_v31 }
  0x99   : > { %579 = vmatprep.mubr.f32.mxu0 %v207_v9 }
  0x9a   : > { %632 = vmatmul.mubr.f32.vlgmr.msra.gmra.mrb[0].mxu1 %v207_v9 }
  0x9c   : > { %580 = vmatmul.mubr.f32.gmra.mrb[2].mxu0 %v207_v9 }
 0x16b   : > { %v339_v19 = vpop.f32.mrb[0].mxu0 }
 0x16c   : > { %v340_v20 = vadd.f32 %v339_v19, %v261_v16  ;;  %v341_v21 = vpop.f32.mrb[1].mxu0 }
 0x16d   : > { %v633_v22 = vpop.f32.mrb[0].mxu1  ;;  %v342_v23 = vadd.f32 %v341_v21, %v265_v17 }
 0x16e   : > { %v422_v24 = vadd.f32 %v633_v22, %v269_v18  ;;  %v416_v25 = vpop.f32.mrb[1].mxu1  ;;  %425 = vst [vmem:[%s203_s9] sm:$0xff] %v340_v20 }
 0x16f   : > { %v417_v26 = vadd.f32 %v416_v25, %v269_v18  ;;  %426 = vst [vmem:[%s203_s9 + $0x8] sm:$0xff] %v342_v23  ;;  %v345_v27 = vpop.f32.mrb[2].mxu0 }
 0x170   : > { %430 = vst [vmem:[%s203_s9 + $0x28] sm:$0xff] %v422_v24  ;;  %v346_v28 = vadd.f32 %v345_v27, %v261_v16  ;;  %v347_v29 = vpop.f32.mrb[3].mxu0 }
 0x171   : > { %427 = vst [vmem:[%s203_s9 + $0x10] sm:$0xff] %v417_v26  ;;  %v348_v30 = vadd.f32 %v347_v29, %v265_v17 }
 0x172   : > { %428 = vst [vmem:[%s203_s9 + $0x18] sm:$0xff] %v346_v28 }
 0x173   : > { %429 = vst [vmem:[%s203_s9 + $0x20] sm:$0xff] %v348_v30 }
 0x174   : > { %832 = shalt.err (!%p829_p7)
}
 0x175   : > { %s833_s22 = scalar_lea.hbm %s1086_s5, 768  ;;  %s837_s11 = scalar_lea.hbm %s1132_s3, 3072 }
 0x176   : > { %p834_p9 = scmp.ne.s32.totalorder %s1086_s5, %s833_s22  ;;  %p838_p5 = scmp.lt.u32.totalorder %s1086_s5, %s1132_s3 }
 0x177   : > { %p839_p10 = scmp.lt.u32.totalorder %s837_s11, %s833_s22  ;;  %p841_p4 = scmp.lt.u32.totalorder %s833_s22, %s1086_s5 }
 0x178   : > { %p835_p1 = pnand %p834_p9, %p1004_p12 }
 0x179   : > { %p840_p2 = por %p839_p10, %p838_p5 }
 0x17a   : > { %p836_p0 = pneg %p835_p1 }
 0x17b   : > { %p842_p6 = por %p841_p4, %p840_p2 }
 0x17d   : > { %p843_p8 = pnand %p842_p6, %p836_p0 }
 0x17f   : > { %846 = shalt.err (!%p843_p8)
}
 0x180   : > { %s896_s8 = smov 384   ;;  %s897_s9 = smov 24  }
 0x181   : > { %706 = dma.vmem_to_hbm [thread:$0]  (%p1004_p12), %s1081_s4, 768, %s1086_s5, %s432_s27, %s896_s8, %s896_s8, %s897_s9  }
 0x182 PF: > { %p723_p11 = scmp.ge.s32.totalorder %s889_s15, 2  ;;  %s461_s25 = sand.u32 1, %s877_s12  }
 0x183   : > { %p1147_p13 = scmp.ne.s32.totalorder %s1137_s19, 0  ;;  %s462_s26 = scalar_lea.sflag [#allocation4], %s461_s25 }
 0x185   : > { %p717_p3 = pnand %p723_p11, %p1147_p13 }
 0x187   : > { %872 = dma.done.wait (!%p717_p3), %s462_s26, 768  }
 0x188   : > { %874 = vsyncadd (!%p717_p3), %s462_s26, 4294966528  ;;  %p17_p7 = scmp.ge.s32.totalorder %s971_s24, 6   ;;  %s1148_s12 = smov %s881_s13 }
 0x189   : > { %s1149_s13 = smov %s885_s14  ;;  %s1150_s14 = smov %s1000_s17 }
 0x18a   : > { %s1151_s15 = smov %s971_s24  ;;  %19 = sbr.rel (!%p17_p7) target bundleno = 6 (0x6), region = 81 }
 0x191   :  { %467 = vsyncpa [#allocation3], 1 }
 0x192   :  { %469 = vsyncpa [#allocation3 + $0x1], 1 }
 0x193   :  { %470 = vsyncpa [#allocation6], 1 }
 0x194   :  { %471 = vsyncpa [#allocation4], 1 }
 0x195   :  { %473 = vsyncpa [#allocation4 + $0x1], 1 }

</bundles_post_ra>
